<compile_context>
chip_gen: v6e
topology: v6e:2x2x1
jax: 0.10.0
libtpu: 0.0.40
codegen_flags: <defaults>
</compile_context>

<pallas_src>
import functools

import jax
import jax.numpy as jnp
from jax.experimental import pallas as pl
from jax.experimental.pallas import tpu as pltpu


# ---------------------------------------------------------------------------
# helpers
# ---------------------------------------------------------------------------
def _round_up(x, m):
    return ((x + m - 1) // m) * m


def _pick_tile(total, candidates):
    for c in candidates:
        if total % c == 0:
            return c
    return total


def _pick_parallel_tile(total, candidates):
    # Prefer a tile that yields an even, >=2 grid so both v7x TensorCores get
    # balanced work on the "parallel" axis.
    for c in candidates:
        if total % c == 0 and (total // c) >= 2 and (total // c) % 2 == 0:
            return c
    return _pick_tile(total, candidates)


# ---------------------------------------------------------------------------
# Kernel 1: fused linear + ReLU (encoder), tiled over rows, bf16 output
# ---------------------------------------------------------------------------
def _linear_relu_kernel(x_ref, w_ref, b_ref, o_ref):
    y = jnp.dot(x_ref[...].astype(jnp.bfloat16), w_ref[...],
                preferred_element_type=jnp.float32)
    o_ref[...] = jnp.maximum(y + b_ref[...], 0.0).astype(o_ref.dtype)


def linear_relu(x, w, b, tm):
    n, f = x.shape
    hd = w.shape[1]
    return pl.pallas_call(
        _linear_relu_kernel,
        grid=(n // tm,),
        out_shape=jax.ShapeDtypeStruct((n, hd), jnp.bfloat16),
        in_specs=[
            pl.BlockSpec((tm, f), lambda i: (i, 0)),
            pl.BlockSpec((f, hd), lambda i: (0, 0)),
            pl.BlockSpec((1, hd), lambda i: (0, 0)),
        ],
        out_specs=pl.BlockSpec((tm, hd), lambda i: (i, 0)),
        compiler_params=pltpu.CompilerParams(
            dimension_semantics=("parallel",)),
    )(x, w.astype(jnp.bfloat16), b.reshape(1, hd))


# ---------------------------------------------------------------------------
# Kernel 2a: GATConv node projection  h = x @ W  plus per-node logit terms
#   s_dst = h . a_dst, s_src = h . a_src   (hoisted out of the attention loop)
# ---------------------------------------------------------------------------
def _project_kernel(x_ref, w_ref, a_src_ref, a_dst_ref,
                    h_ref, sdst_ref, ssrc_ref):
    h = jnp.dot(x_ref[...].astype(jnp.bfloat16), w_ref[...],
                preferred_element_type=jnp.float32)          # (tm, H) f32
    h_ref[...] = h.astype(jnp.bfloat16)
    sdst_ref[...] = jnp.sum(h * a_dst_ref[...], axis=-1, keepdims=True)
    ssrc_ref[...] = jnp.sum(h * a_src_ref[...], axis=-1, keepdims=True)


def gat_project(x, w, a_src, a_dst, tm):
    n, f = x.shape
    hd = w.shape[1]
    return pl.pallas_call(
        _project_kernel,
        grid=(n // tm,),
        out_shape=(
            jax.ShapeDtypeStruct((n, hd), jnp.bfloat16),   # h (values)
            jax.ShapeDtypeStruct((n, 1), jnp.float32),     # s_dst
            jax.ShapeDtypeStruct((n, 1), jnp.float32),     # s_src
        ),
        in_specs=[
            pl.BlockSpec((tm, f), lambda i: (i, 0)),
            pl.BlockSpec((f, hd), lambda i: (0, 0)),
            pl.BlockSpec((1, hd), lambda i: (0, 0)),
            pl.BlockSpec((1, hd), lambda i: (0, 0)),
        ],
        out_specs=(
            pl.BlockSpec((tm, hd), lambda i: (i, 0)),
            pl.BlockSpec((tm, 1), lambda i: (i, 0)),
            pl.BlockSpec((tm, 1), lambda i: (i, 0)),
        ),
        compiler_params=pltpu.CompilerParams(
            dimension_semantics=("parallel",)),
    )(x, w.astype(jnp.bfloat16), a_src.reshape(1, hd), a_dst.reshape(1, hd))


# ---------------------------------------------------------------------------
# Kernel 2b: GATConv attention, flash-style online softmax over kv tiles,
#   int8 adjacency mask + block-sparse tile skipping via scalar prefetch.
#   e[i, j] = LeakyReLU(s_dst[i] + s_src[j])  (masked entries -> -1e30)
#   out[i]  = softmax_j(e[i, :]) @ h + b
# ---------------------------------------------------------------------------
def _gat_attn_kernel(occ_ref, hk_ref, mask_ref, sdst_ref, ssrc_ref, b_ref,
                     o_ref, m_sc, l_sc, acc_sc, *, apply_relu, neg_slope, nkt):
    i = pl.program_id(0)
    j = pl.program_id(1)

    @pl.when(j == 0)
    def _():
        m_sc[...] = jnp.full_like(m_sc, -jnp.inf)
        l_sc[...] = jnp.zeros_like(l_sc)
        acc_sc[...] = jnp.zeros_like(acc_sc)

    # Skip tiles that contain no edges (their softmax contribution is exactly 0).
    @pl.when(occ_ref[i * nkt + j] > 0)
    def _():
        e = sdst_ref[...] + ssrc_ref[...]                 # (tq,1)+(1,tk) -> (tq,tk)
        e = jnp.where(e > 0.0, e, neg_slope * e)          # LeakyReLU(0.2)
        e = jnp.where(mask_ref[...] > 0, e, -1e30)        # mask from int8 adjacency

        m_prev = m_sc[...]
        m_new = jnp.maximum(m_prev, jnp.max(e, axis=-1, keepdims=True))
        alpha = jnp.exp(m_prev - m_new)
        p = jnp.exp(e - m_new)

        l_sc[...] = alpha * l_sc[...] + jnp.sum(p, axis=-1, keepdims=True)
        acc_sc[...] = alpha * acc_sc[...] + jnp.dot(
            p.astype(jnp.bfloat16), hk_ref[...],
            preferred_element_type=jnp.float32)
        m_sc[...] = m_new

    @pl.when(j == pl.num_programs(1) - 1)
    def _():
        out = acc_sc[...] * pl.reciprocal(l_sc[...], approx=True) + b_ref[...]
        if apply_relu:
            out = jnp.maximum(out, 0.0)
        o_ref[...] = out.astype(o_ref.dtype)


def gat_attention(h, s_dst, s_src_row, adj, occ, b, apply_relu, tq, tk):
    n_p, hd = h.shape
    nkt = n_p // tk
    kernel = functools.partial(_gat_attn_kernel, apply_relu=apply_relu,
                               neg_slope=0.2, nkt=nkt)
    return pl.pallas_call(
        kernel,
        out_shape=jax.ShapeDtypeStruct((n_p, hd), jnp.bfloat16),
        grid_spec=pltpu.PrefetchScalarGridSpec(
            num_scalar_prefetch=1,
            grid=(n_p // tq, nkt),
            in_specs=[
                pl.BlockSpec((tk, hd), lambda i, j, occ: (j, 0)),   # value tile
                pl.BlockSpec((tq, tk), lambda i, j, occ: (i, j)),   # int8 mask tile
                pl.BlockSpec((tq, 1), lambda i, j, occ: (i, 0)),    # s_dst column
                pl.BlockSpec((1, tk), lambda i, j, occ: (0, j)),    # s_src row
                pl.BlockSpec((1, hd), lambda i, j, occ: (0, 0)),    # output bias
            ],
            out_specs=pl.BlockSpec((tq, hd), lambda i, j, occ: (i, 0)),
            scratch_shapes=[
                pltpu.VMEM((tq, 1), jnp.float32),   # running max
                pltpu.VMEM((tq, 1), jnp.float32),   # running sum
                pltpu.VMEM((tq, hd), jnp.float32),  # accumulator
            ]),
        compiler_params=pltpu.CompilerParams(
            dimension_semantics=("parallel", "arbitrary")),
    )(occ, h, adj, s_dst, s_src_row, b.reshape(1, hd))


# ---------------------------------------------------------------------------
# Kernel 3: edge decoder MLP:  [h_src || h_dst || e_enc] @ W1 -> relu -> @ W2
#   single K=3H matmul, tiled over edges, lane-dense (tE, 128) bf16 output slab
# ---------------------------------------------------------------------------
def _decoder_kernel(z_ref, w1_ref, b1_ref, w2_ref, b2_ref, o_ref):
    hidden = jnp.dot(z_ref[...], w1_ref[...],
                     preferred_element_type=jnp.float32) + b1_ref[...]
    hidden = jnp.maximum(hidden, 0.0)
    out = jnp.dot(hidden.astype(jnp.bfloat16), w2_ref[...],
                  preferred_element_type=jnp.float32) + b2_ref[...]
    o_ref[...] = out.astype(o_ref.dtype)


def edge_decoder(z, w1, b1, w2, b2, tE):
    e_p, k = z.shape
    hd = w1.shape[1]
    # Pad the final projection to a lane-dense (H, 128) weight: column 0 = w2.
    w2_pad = jnp.zeros((hd, 128), jnp.float32).at[:, 0].set(w2.reshape(-1))
    b2_pad = jnp.zeros((1, 128), jnp.float32).at[0, 0].set(b2.reshape(-1)[0])
    return pl.pallas_call(
        _decoder_kernel,
        grid=(e_p // tE,),
        out_shape=jax.ShapeDtypeStruct((e_p, 128), jnp.bfloat16),
        in_specs=[
            pl.BlockSpec((tE, k), lambda i: (i, 0)),
            pl.BlockSpec((k, hd), lambda i: (0, 0)),
            pl.BlockSpec((1, hd), lambda i: (0, 0)),
            pl.BlockSpec((hd, 128), lambda i: (0, 0)),
            pl.BlockSpec((1, 128), lambda i: (0, 0)),
        ],
        out_specs=pl.BlockSpec((tE, 128), lambda i: (i, 0)),
        compiler_params=pltpu.CompilerParams(
            dimension_semantics=("parallel",)),
    )(z, w1.astype(jnp.bfloat16), b1.reshape(1, hd),
      w2_pad.astype(jnp.bfloat16), b2_pad)


# ---------------------------------------------------------------------------
# Parameters
# ---------------------------------------------------------------------------
def init_params(key, node_feature_dim, edge_feature_dim, hidden_dim, num_gnn_layers):
    keys = jax.random.split(key, 8 + 4 * num_gnn_layers)
    ki = iter(range(len(keys)))
    scale = 0.1
    p = {
        "enc_wn": scale * jax.random.normal(keys[next(ki)], (node_feature_dim, hidden_dim), jnp.float32),
        "enc_bn": scale * jax.random.normal(keys[next(ki)], (hidden_dim,), jnp.float32),
        "enc_we": scale * jax.random.normal(keys[next(ki)], (edge_feature_dim, hidden_dim), jnp.float32),
        "enc_be": scale * jax.random.normal(keys[next(ki)], (hidden_dim,), jnp.float32),
        "gnn": [],
        "dec_w1": scale * jax.random.normal(keys[next(ki)], (3 * hidden_dim, hidden_dim), jnp.float32),
        "dec_b1": scale * jax.random.normal(keys[next(ki)], (hidden_dim,), jnp.float32),
        "dec_w2": scale * jax.random.normal(keys[next(ki)], (hidden_dim, 1), jnp.float32),
        "dec_b2": scale * jax.random.normal(keys[next(ki)], (1,), jnp.float32),
    }
    for _ in range(num_gnn_layers):
        p["gnn"].append({
            "w": scale * jax.random.normal(keys[next(ki)], (hidden_dim, hidden_dim), jnp.float32),
            "b": scale * jax.random.normal(keys[next(ki)], (hidden_dim,), jnp.float32),
            "a_src": scale * jax.random.normal(keys[next(ki)], (hidden_dim,), jnp.float32),
            "a_dst": scale * jax.random.normal(keys[next(ki)], (hidden_dim,), jnp.float32),
        })
    return p


# ---------------------------------------------------------------------------
# Full GAT forward (glue in plain JAX, compute in Pallas kernels)
# ---------------------------------------------------------------------------
def gat_forward(params, x, edge_index, edge_attr):
    n = x.shape[0]
    e = edge_attr.shape[0]
    src, dst = edge_index[0], edge_index[1]

    # Pad nodes / edges to multiples of 128 so all tiles are TPU-friendly.
    n_p = _round_up(n, 128)
    e_p = _round_up(e, 128)
    x_p = jnp.pad(x, ((0, n_p - n), (0, 0)))
    ea_p = jnp.pad(edge_attr, ((0, e_p - e), (0, 0)))

    # Compressed int8 adjacency mask (1 where edge j->i exists or i == j; self
    # loops also on padded ghost rows so every row is well defined).
    # TODO(synk): for graphs that are static across calls, hoist this O(N^2)
    # construction out of the jitted forward pass.
    diag = jnp.arange(n_p)
    adj = jnp.zeros((n_p, n_p), jnp.int8)
    adj = adj.at[dst, src].set(1)
    adj = adj.at[diag, diag].set(1)

    # Tile sizes (big tiles to amortize grid-step overhead; a few MiB of VMEM).
    tm = _pick_tile(n_p, (512, 256, 128))
    tq = _pick_parallel_tile(n_p, (512, 256, 128))
    tk = _pick_tile(n_p, (1024, 512, 256, 128))
    tE = _pick_tile(e_p, (512, 256, 128))

    # Tile-occupancy table for block-sparse skipping (flat 1D to keep SMEM small).
    nqt, nkt = n_p // tq, n_p // tk
    occ = adj.reshape(nqt, tq, nkt, tk).max(axis=(1, 3)).astype(jnp.int32).reshape(-1)

    # --- Encoder ---
    x_enc = linear_relu(x_p, params["enc_wn"], params["enc_bn"], tm)
    e_enc = linear_relu(ea_p, params["enc_we"], params["enc_be"], tE)

    # --- GNN (stack of GATConv layers, ReLU between layers) ---
    h = x_enc
    num_layers = len(params["gnn"])
    for li, lp in enumerate(params["gnn"]):
        apply_relu = li < num_layers - 1
        h_proj, s_dst, s_src = gat_project(h, lp["w"], lp["a_src"], lp["a_dst"], tm)
        s_src_row = s_src.reshape(1, n_p)                  # lane-major row layout
        h = gat_attention(h_proj, s_dst, s_src_row, adj, occ,
                          lp["b"], apply_relu, tq, tk)     # (n_p, H) bf16

    # --- Decoder (per-edge MLP on [h_src || h_dst || e_enc], all bf16) ---
    src_p = jnp.pad(src, (0, e_p - e))
    dst_p = jnp.pad(dst, (0, e_p - e))
    h_src = jnp.take(h, src_p, axis=0)
    h_dst = jnp.take(h, dst_p, axis=0)
    z = jnp.concatenate([h_src, h_dst, e_enc], axis=-1)    # (e_p, 3H) bf16

    out = edge_decoder(z, params["dec_w1"], params["dec_b1"],
                       params["dec_w2"], params["dec_b2"], tE)   # (e_p, 128) bf16
    return out[:e, :1].astype(jnp.float32)                 # [E, 1] f32


if __name__ == "__main__":
    node_feature_dim = 8
    edge_feature_dim = 8
    hidden_dim = 32
    num_gnn_layers = 2
    num_nodes = 16
    num_edges = 32

    key = jax.random.PRNGKey(0)
    k_x, k_ei, k_ea, k_p = jax.random.split(key, 4)

    x = jax.random.normal(k_x, (num_nodes, node_feature_dim), jnp.float32)
    edge_index = jax.random.randint(k_ei, (2, num_edges), 0, num_nodes, jnp.int32)
    edge_attr = jax.random.normal(k_ea, (num_edges, edge_feature_dim), jnp.float32)

    params = init_params(k_p, node_feature_dim, edge_feature_dim, hidden_dim,
                         num_gnn_layers)

    out = gat_forward(params, x, edge_index, edge_attr)
    out = jax.block_until_ready(out)

    assert out.shape == (num_edges, 1), out.shape
    assert bool(jnp.all(jnp.isfinite(out)))
    print("KERNEL_OK")
</pallas_src>

<mosaic_0001>
module attributes {stable_mosaic.version = 11 : i64} {
  func.func @_linear_relu_kernel(%arg0: i32, %arg1: memref<128x8xf32, #tpu.memory_space<vmem>>, %arg2: memref<8x32xbf16, #tpu.memory_space<vmem>>, %arg3: memref<1x32xf32, #tpu.memory_space<vmem>>, %arg4: memref<128x32xbf16, #tpu.memory_space<vmem>>) attributes {dimension_semantics = [#tpu.dimension_semantics<parallel>], iteration_bounds = array<i64: 1>, scalar_prefetch = 0 : i64, scratch_operands = 0 : i64, tpu.core_type = #tpu.core_type<tc>, window_params = [{transform_indices = @transform_0, window_bounds = array<i64: 128, 8>}, {pipeline_mode = #tpu.pipeline_mode<synchronous>, transform_indices = @transform_1, window_bounds = array<i64: 8, 32>}, {pipeline_mode = #tpu.pipeline_mode<synchronous>, transform_indices = @transform_2, window_bounds = array<i64: 1, 32>}, {transform_indices = @transform_3, window_bounds = array<i64: 128, 32>}]} {
    %c0 = arith.constant 0 : index
    %c0_0 = arith.constant 0 : index
    %0 = vector.load %arg1[%c0, %c0_0] : memref<128x8xf32, #tpu.memory_space<vmem>>, vector<128x8xf32>
    %1 = arith.truncf %0 : vector<128x8xf32> to vector<128x8xbf16>
    %c0_1 = arith.constant 0 : index
    %c0_2 = arith.constant 0 : index
    %2 = vector.load %arg2[%c0_1, %c0_2] : memref<8x32xbf16, #tpu.memory_space<vmem>>, vector<8x32xbf16>
    %cst = arith.constant dense<0.000000e+00> : vector<128x32xf32>
    %3 = tpu.matmul %1, %2, %cst {dimension_numbers = #tpu.dot_dimension_numbers<[1], [0], [0], [1], [0, 0, 1, 1], [], []>} : vector<128x8xbf16>, vector<8x32xbf16>, vector<128x32xf32> -> vector<128x32xf32>
    %c0_3 = arith.constant 0 : index
    %c0_4 = arith.constant 0 : index
    %4 = vector.load %arg3[%c0_3, %c0_4] : memref<1x32xf32, #tpu.memory_space<vmem>>, vector<1x32xf32>
    %5 = vector.broadcast %4 : vector<1x32xf32> to vector<128x32xf32>
    %6 = arith.addf %3, %5 : vector<128x32xf32>
    %cst_5 = arith.constant 0.000000e+00 : f32
    %7 = vector.broadcast %cst_5 : f32 to vector<128x32xf32>
    %8 = arith.maximumf %6, %7 : vector<128x32xf32>
    %9 = arith.truncf %8 : vector<128x32xf32> to vector<128x32xbf16>
    %c0_6 = arith.constant 0 : index
    %c0_7 = arith.constant 0 : index
    %10 = vector.load %arg4[%c0_6, %c0_7] : memref<128x32xbf16, #tpu.memory_space<vmem>>, vector<128x32xbf16>
    tpu.vector_store %arg4[%c0_6, %c0_7], %9 {strides = array<i32>} : memref<128x32xbf16, #tpu.memory_space<vmem>>, vector<128x32xbf16>,
    return
  }
  func.func @transform_0(%arg0: i32) -> (i32, i32) {
    %c0_i32 = arith.constant 0 : i32
    %c0_i32_0 = arith.constant 0 : i32
    return %arg0, %c0_i32 : i32, i32
  }
  func.func @transform_1(%arg0: i32) -> (i32, i32) {
    %c0_i32 = arith.constant 0 : i32
    %c0_i32_0 = arith.constant 0 : i32
    %c0_i32_1 = arith.constant 0 : i32
    return %c0_i32, %c0_i32_0 : i32, i32
  }
  func.func @transform_2(%arg0: i32) -> (i32, i32) {
    %c0_i32 = arith.constant 0 : i32
    %c0_i32_0 = arith.constant 0 : i32
    %c0_i32_1 = arith.constant 0 : i32
    return %c0_i32, %c0_i32_0 : i32, i32
  }
  func.func @transform_3(%arg0: i32) -> (i32, i32) {
    %c0_i32 = arith.constant 0 : i32
    %c0_i32_0 = arith.constant 0 : i32
    return %arg0, %c0_i32 : i32, i32
  }
}

</mosaic_0001>

<bundles_post_ra>
// kernel: tpu_custom_call.1
= control target key start
LH: loop header
LB: loop body
LE: loop exit
PB: predicated region body
PF: predicated region fallthrough
CT: control target
= control target key end

     0   :  { %vm72_vm0 = vcmask 1043456   ;;  %vm47_vm1 = vcmask 64512   ;;  %vm253_vm2 = vcmask 257024   ;;  %s510_s1 = inlined_call_operand.vmem [shape: bf16[8,32], index: 1, kind: input, shape index: {}]   ;;  %s511_s0 = inlined_call_operand.vmem [shape: f32[128,8], index: 0, kind: input, shape index: {}]   ;;  %s512_s2 = inlined_call_operand.vmem [shape: f32[1,32], index: 2, kind: input, shape index: {}]   ;;  %s513_s3 = inlined_call_operand.vmem [shape: bf16[128,32], index: 3, kind: output, shape index: {}]  }
   0x1   :  { %v39_v0 = vld [vmem:[%s510_s1] sm:$0xf]  ;;  %v16_v2 = vld [vmem:[%s511_s0 + $0x8] sm:$0xff]  ;;  %v17_v7 = vld [vmem:[%s511_s0 + $0x10] sm:$0xff] }
   0x2   :  { %v15_v1 = vld [vmem:[%s511_s0] sm:$0xff]  ;;  %344 = vmatprep.subr.msk.bf16.mxu0 %vm72_vm0, %v39_v0  ;;  %345 = vmatprep.subr.msk.bf16.mxu1 %vm72_vm0, %v39_v0  ;;  %v74_v3 = vsel %vm72_vm0, %v39_v0, 0  ;;  %v24_v6 = vld [vmem:[%s511_s0 + $0x48] sm:$0xff]  ;;  %v18_v9 = vld [vmem:[%s511_s0 + $0x18] sm:$0xff] }
   0x3   :  { %v31_v4 = vpack.c.bf16 %v16_v2, %v15_v1  ;;  %v23_v5 = vld [vmem:[%s511_s0 + $0x40] sm:$0xff]  ;;  %325 = vmatpush3.bf16.msra.mxu0 %v74_v3  ;;  %343 = vmatpush3.bf16.msra.mxu1 %v74_v3  ;;  %v25_v10 = vld [vmem:[%s511_s0 + $0x50] sm:$0xff]  ;;  %v26_v11 = vld [vmem:[%s511_s0 + $0x58] sm:$0xff]  ;;  %v32_v12 = vpack.c.bf16 %v18_v9, %v17_v7 }
   0x4   :  { %v35_v8 = vpack.c.bf16 %v24_v6, %v23_v5  ;;  %v36_v13 = vpack.c.bf16 %v26_v11, %v25_v10  ;;  %v19_v14 = vld [vmem:[%s511_s0 + $0x20] sm:$0xff]  ;;  %v20_v15 = vld [vmem:[%s511_s0 + $0x28] sm:$0xff]  ;;  %v21_v20 = vld [vmem:[%s511_s0 + $0x30] sm:$0xff] }
   0x5   :  { %326 = vmatprep.mubr.msk.bf16.mxu0 %vm47_vm1, %v31_v4  ;;  %v27_v16 = vld [vmem:[%s511_s0 + $0x60] sm:$0xff]  ;;  %v33_v17 = vpack.c.bf16 %v20_v15, %v19_v14  ;;  %v28_v18 = vld [vmem:[%s511_s0 + $0x68] sm:$0xff]  ;;  %v22_v21 = vld [vmem:[%s511_s0 + $0x38] sm:$0xff] }
   0x6   :  { %334 = vmatprep.mubr.msk.bf16.mxu1 %vm47_vm1, %v35_v8  ;;  %327 = vmatmul.mubr.msk.bf16.vlgmr.msra.gmra.mxu0 %vm47_vm1, %v32_v12  ;;  %v37_v19 = vpack.c.bf16 %v28_v18, %v27_v16  ;;  %v29_v22 = vld [vmem:[%s511_s0 + $0x70] sm:$0xff]  ;;  %v30_v23 = vld [vmem:[%s511_s0 + $0x78] sm:$0xff]  ;;  %v34_v24 = vpack.c.bf16 %v22_v21, %v21_v20  ;;  %v428_v26 = vld [vmem:[%s512_s2] ss:$0 sm:$0xff] }
   0x7   :  { %335 = vmatmul.mubr.msk.bf16.vlgmr.msra.gmra.mxu1 %vm47_vm1, %v36_v13  ;;  %330 = vmatprep.mubr.msk.bf16.mxu0 %vm47_vm1, %v33_v17  ;;  %v38_v25 = vpack.c.bf16 %v30_v23, %v29_v22 }
   0x8   :  { %338 = vmatprep.mubr.msk.bf16.mxu1 %vm47_vm1, %v37_v19 }
   0xe   :  { %331 = vmatmul.mubr.msk.bf16.gmra.mxu0 %vm47_vm1, %v34_v24 }
   0xf   :  { %339 = vmatmul.mubr.msk.bf16.gmra.mxu1 %vm47_vm1, %v38_v25 }
  0xc6   :  { %v328_v27 = vpop.f32.mrf.mxu0 }
  0xc7   :  { %v336_v28 = vpop.f32.mrf.mxu1  ;;  %v119_v29 = vadd.f32 %v328_v27, %v428_v26 }
  0xc8   :  { %v151_v30 = vadd.f32 %v336_v28, %v428_v26  ;;  %v110_v31 = vpop.f32.mrf.mxu0 }
  0xc9   :  { %v142_v32 = vpop.f32.mrf.mxu1  ;;  %v175_v33 = vmax.f32 %v119_v29, 0.0  ;;  %v111_v35 = vadd.f32 %v428_v26, %v110_v31 }
  0xca   :  { %v183_v34 = vmax.f32 %v151_v30, 0.0  ;;  %v143_v36 = vadd.f32 %v428_v26, %v142_v32  ;;  %v329_v37 = vpop.f32.mrf.mxu0 }
  0xcb   :  { %v337_v38 = vpop.f32.mrf.mxu1  ;;  %v301_v39 = vpack.c.bf16 %v175_v33, %v175_v33  ;;  %v173_v41 = vmax.f32 %v111_v35, 0.0  ;;  %v122_v43 = vadd.f32 %v329_v37, %v428_v26 }
  0xcc   :  { %v309_v40 = vpack.c.bf16 %v183_v34, %v183_v34  ;;  %v181_v42 = vmax.f32 %v143_v36, 0.0  ;;  %v154_v44 = vadd.f32 %v337_v38, %v428_v26  ;;  %v113_v45 = vpop.f32.mrf.mxu0 }
  0xcd   :  { %v145_v46 = vpop.f32.mrf.mxu1  ;;  %256 = vst.msk [vmem:[%s513_s3 + $0x8] sm:$0xf] %vm253_vm2, %v301_v39  ;;  %v299_v47 = vpack.c.bf16 %v173_v41, %v173_v41  ;;  %v114_v49 = vadd.f32 %v428_v26, %v113_v45  ;;  %v176_v51 = vmax.f32 %v122_v43, 0.0 }
  0xce   :  { %264 = vst.msk [vmem:[%s513_s3 + $0x28] sm:$0xf] %vm253_vm2, %v309_v40  ;;  %v307_v48 = vpack.c.bf16 %v181_v42, %v181_v42  ;;  %v146_v50 = vadd.f32 %v428_v26, %v145_v46  ;;  %v184_v52 = vmax.f32 %v154_v44, 0.0  ;;  %v332_v53 = vpop.f32.mrf.mxu0 }
  0xcf   :  { %v340_v54 = vpop.f32.mrf.mxu1  ;;  %254 = vst.msk [vmem:[%s513_s3] sm:$0xf] %vm253_vm2, %v299_v47  ;;  %v174_v55 = vmax.f32 %v114_v49, 0.0  ;;  %v135_v57 = vadd.f32 %v332_v53, %v428_v26  ;;  %v302_v59 = vpack.c.bf16 %v176_v51, %v176_v51 }
  0xd0   :  { %262 = vst.msk [vmem:[%s513_s3 + $0x20] sm:$0xf] %vm253_vm2, %v307_v48  ;;  %v182_v56 = vmax.f32 %v146_v50, 0.0  ;;  %v167_v58 = vadd.f32 %v340_v54, %v428_v26  ;;  %v310_v60 = vpack.c.bf16 %v184_v52, %v184_v52  ;;  %v126_v61 = vpop.f32.mrf.mxu0 }
  0xd1   :  { %v158_v62 = vpop.f32.mrf.mxu1  ;;  %v300_v63 = vpack.c.bf16 %v174_v55, %v174_v55  ;;  %v179_v1 = vmax.f32 %v135_v57, 0.0  ;;  %257 = vst.msk [vmem:[%s513_s3 + $0xc] sm:$0xf] %vm253_vm2, %v302_v59  ;;  %v127_v3 = vadd.f32 %v428_v26, %v126_v61 }
  0xd2   :  { %v308_v0 = vpack.c.bf16 %v182_v56, %v182_v56  ;;  %v187_v2 = vmax.f32 %v167_v58, 0.0  ;;  %265 = vst.msk [vmem:[%s513_s3 + $0x2c] sm:$0xf] %vm253_vm2, %v310_v60  ;;  %v159_v4 = vadd.f32 %v428_v26, %v158_v62  ;;  %v333_v5 = vpop.f32.mrf.mxu0 }
  0xd3   :  { %v341_v6 = vpop.f32.mrf.mxu1  ;;  %255 = vst.msk [vmem:[%s513_s3 + $0x4] sm:$0xf] %vm253_vm2, %v300_v63  ;;  %v305_v7 = vpack.c.bf16 %v179_v1, %v179_v1  ;;  %v138_v9 = vadd.f32 %v333_v5, %v428_v26  ;;  %v177_v11 = vmax.f32 %v127_v3, 0.0 }
  0xd4   :  { %263 = vst.msk [vmem:[%s513_s3 + $0x24] sm:$0xf] %vm253_vm2, %v308_v0  ;;  %v313_v8 = vpack.c.bf16 %v187_v2, %v187_v2  ;;  %v170_v10 = vadd.f32 %v341_v6, %v428_v26  ;;  %v185_v12 = vmax.f32 %v159_v4, 0.0  ;;  %v129_v13 = vpop.f32.mrf.mxu0 }
  0xd5   :  { %v161_v14 = vpop.f32.mrf.mxu1  ;;  %260 = vst.msk [vmem:[%s513_s3 + $0x18] sm:$0xf] %vm253_vm2, %v305_v7  ;;  %v180_v15 = vmax.f32 %v138_v9, 0.0  ;;  %v130_v17 = vadd.f32 %v428_v26, %v129_v13  ;;  %v303_v19 = vpack.c.bf16 %v177_v11, %v177_v11 }
  0xd6   :  { %268 = vst.msk [vmem:[%s513_s3 + $0x38] sm:$0xf] %vm253_vm2, %v313_v8  ;;  %v188_v16 = vmax.f32 %v170_v10, 0.0  ;;  %v162_v18 = vadd.f32 %v428_v26, %v161_v14  ;;  %v311_v20 = vpack.c.bf16 %v185_v12, %v185_v12 }
  0xd7   :  { %v306_v21 = vpack.c.bf16 %v180_v15, %v180_v15  ;;  %v178_v23 = vmax.f32 %v130_v17, 0.0  ;;  %258 = vst.msk [vmem:[%s513_s3 + $0x10] sm:$0xf] %vm253_vm2, %v303_v19 }
  0xd8   :  { %v314_v22 = vpack.c.bf16 %v188_v16, %v188_v16  ;;  %v186_v24 = vmax.f32 %v162_v18, 0.0  ;;  %266 = vst.msk [vmem:[%s513_s3 + $0x30] sm:$0xf] %vm253_vm2, %v311_v20 }
  0xd9   :  { %261 = vst.msk [vmem:[%s513_s3 + $0x1c] sm:$0xf] %vm253_vm2, %v306_v21  ;;  %v304_v25 = vpack.c.bf16 %v178_v23, %v178_v23 }
  0xda   :  { %269 = vst.msk [vmem:[%s513_s3 + $0x3c] sm:$0xf] %vm253_vm2, %v314_v22  ;;  %v312_v26 = vpack.c.bf16 %v186_v24, %v186_v24 }
  0xdb   :  { %259 = vst.msk [vmem:[%s513_s3 + $0x14] sm:$0xf] %vm253_vm2, %v304_v25 }
  0xdc   :  { %267 = vst.msk [vmem:[%s513_s3 + $0x34] sm:$0xf] %vm253_vm2, %v312_v26 }

</bundles_post_ra>
